<compile_context>
chip_gen: v7x
topology: tpu7x:2x2x1
jax: 0.10.0
libtpu: 0.0.40
codegen_flags: <defaults>
</compile_context>

<pallas_src>
import jax
import jax.numpy as jnp
from jax.experimental import pallas as pl
from jax.experimental.pallas import tpu as pltpu

# ----------------------------- configuration --------------------------------
B = 8            # batch of edges
F = 16           # num_features (per SIGN chunk)
H = 32           # hidden_channels
K = 2            # sign_k
HOPS = 2         # max_hash_hops
L = HOPS * (HOPS + 2)     # raw labelling features = 8
DIM = 2 * L               # append_normalised=True -> 16
C_SGN = 2 * (K + 1) * H   # 192 columns after the block-diagonal SIGN matmul

EPS = 1e-5


def _bn_train(h, gamma, beta):
    """BatchNorm1d, training mode: per-column batch mean + biased variance."""
    m = jnp.mean(h, axis=0, keepdims=True)
    v = jnp.mean((h - m) ** 2, axis=0, keepdims=True)
    return (h - m) * jax.lax.rsqrt(v + EPS) * gamma + beta


# ------------------------------- fused kernel --------------------------------
def buddy_kernel(sf_ref, nf_ref, scal_ref,
                 wsgn_ref, wso_ref, wsmall_ref, rowp_ref, o_ref):
    # ---- row-parameter slab: static ref slices (zero-cost views) ----
    g_label  = rowp_ref[0:1, 0:DIM]
    be_label = rowp_ref[1:2, 0:DIM]
    g_sgn    = rowp_ref[2:3, :]
    be_sgn   = rowp_ref[3:4, :]
    b_so     = rowp_ref[4:5, 0:2 * H]
    g_feat   = rowp_ref[5:6, 0:H]
    be_feat  = rowp_ref[6:7, 0:H]
    wfin_l   = rowp_ref[7:8, 0:DIM]
    wfin_f   = rowp_ref[7:8, DIM:DIM + H]
    wfin_ra  = rowp_ref[7:8, DIM + H:DIM + H + 1]
    misc     = rowp_ref[8:9, 0:3]
    g_ra, be_ra, b_fin = misc[:, 0:1], misc[:, 1:2], misc[:, 2:3]

    # ---- label branch: _append_degree_normalised -> Linear -> BN -> ReLU ----
    sf = sf_ref[...]                                  # [B, L]
    scal = scal_ref[...]                              # [B, 3] = src_deg|dst_deg|RA
    norm = jnp.sqrt(scal[:, 0:1] * scal[:, 1:2])      # [B, 1]
    safe = jnp.where(norm > 0.0, norm, 1.0)           # safe divide (deg==0 rows)
    normed = jnp.where(norm > 0.0, sf / safe, 0.0)
    # Linear(DIM, DIM) on [sf | normed] as two row-split matmuls (no concat).
    # Bias omitted: cancelled exactly by training-mode BN mean subtraction.
    hl = (jnp.dot(sf, wsmall_ref[0:L, 0:DIM],
                  preferred_element_type=jnp.float32)
          + jnp.dot(normed, wsmall_ref[L:DIM, 0:DIM],
                    preferred_element_type=jnp.float32))
    x_label = jnp.maximum(_bn_train(hl, g_label, be_label), 0.0)

    # ---- SIGN stage: one block-diagonal matmul over all (endpoint, chunk) ----
    nf = nf_ref[...]                                  # [B, 2*(K+1)*F]
    h = jnp.dot(nf, wsgn_ref[...],
                preferred_element_type=jnp.float32)   # [B, 192], bias BN-cancelled
    # BN stats are per-column over the batch, so one fused BN over all
    # 2*(K+1)*H columns is numerically identical to the per-(k, endpoint) BNs.
    h = jnp.maximum(_bn_train(h, g_sgn, be_sgn), 0.0)

    # ---- shared SIGN lin_out: block-diag weight, endpoint split = lane slice ----
    y = jnp.dot(h, wso_ref[...],
                preferred_element_type=jnp.float32) + b_so   # [B, 2H]
    z = y[:, 0:H] * y[:, H:2 * H]                     # hadamard of the endpoints
    z = jnp.dot(z, wsmall_ref[DIM:DIM + H, 0:H],      # BUDDY lin_out (bias BN-cancelled)
                preferred_element_type=jnp.float32)
    x_feat = jnp.maximum(_bn_train(z, g_feat, be_feat), 0.0)

    # ---- bn_RA + final Linear(DIM + H + 1, 1) as VPU multiply + row reduce ----
    ra = _bn_train(scal[:, 2:3], g_ra, be_ra)         # [B, 1]
    out = (jnp.sum(x_label * wfin_l, axis=-1, keepdims=True)
           + jnp.sum(x_feat * wfin_f, axis=-1, keepdims=True)
           + ra * wfin_ra + b_fin)
    o_ref[...] = out


def _pcall(kernel, inputs, out_shape):
    return pl.pallas_call(
        kernel,
        out_shape=out_shape,
        in_specs=[pl.BlockSpec(memory_space=pltpu.MemorySpace.VMEM)] * len(inputs),
        out_specs=pl.BlockSpec(memory_space=pltpu.MemorySpace.VMEM),
    )(*inputs)


# --------------------------- parameters (synthetic) ---------------------------
def init_params(key):
    ks = jax.random.split(key, 18)

    def w(k, shape, scale=0.1):
        return scale * jax.random.normal(k, shape, jnp.float32)

    p = {}
    # label_lin_layer: Linear(DIM, DIM)  (stored as [in, out])
    p['w_label'] = w(ks[0], (DIM, DIM))
    p['b_label'] = w(ks[1], (1, DIM), 0.05)
    # bn_labels
    p['g_label'] = 1.0 + w(ks[2], (1, DIM))
    p['be_label'] = w(ks[3], (1, DIM), 0.05)
    # SIGN lins / bns (K+1 of each), Linear(F, H)
    p['w_sign'] = w(ks[4], (K + 1, F, H))
    p['b_sign'] = w(ks[5], (K + 1, 1, H), 0.05)
    p['g_sign'] = 1.0 + w(ks[6], (K + 1, 1, H))
    p['be_sign'] = w(ks[7], (K + 1, 1, H), 0.05)
    # SIGN lin_out: Linear((K+1)*H, H)
    p['w_sign_out'] = w(ks[8], ((K + 1) * H, H))
    p['b_sign_out'] = w(ks[9], (1, H), 0.05)
    # BUDDY lin_out: Linear(H, H)
    p['w_feat_out'] = w(ks[10], (H, H))
    p['b_feat_out'] = w(ks[11], (1, H), 0.05)
    # bn_feats
    p['g_feat'] = 1.0 + w(ks[12], (1, H))
    p['be_feat'] = w(ks[13], (1, H), 0.05)
    # bn_RA
    p['g_ra'] = 1.0 + w(ks[14], (1, 1))
    p['be_ra'] = w(ks[15], (1, 1), 0.05)
    # final lin: Linear(DIM + H + 1, 1)
    p['w_final'] = w(ks[16], (DIM + H + 1, 1))
    p['b_final'] = w(ks[17], (1, 1), 0.05)
    return p


def fuse_params(p):
    """Pack all kernel parameters into 4 slabs (built once, outside the kernel)."""
    # Block-diagonal SIGN weight: column groups (ep0 k0..K | ep1 k0..K).
    blocks = [p['w_sign'][k] for k in range(K + 1)]
    w_sgn_bd = jax.scipy.linalg.block_diag(*(blocks * 2))      # [2(K+1)F, 2(K+1)H]
    g_ep = jnp.concatenate([p['g_sign'][k] for k in range(K + 1)], axis=-1)
    be_ep = jnp.concatenate([p['be_sign'][k] for k in range(K + 1)], axis=-1)
    g_bd = jnp.concatenate([g_ep, g_ep], axis=-1)               # [1, 192]
    be_bd = jnp.concatenate([be_ep, be_ep], axis=-1)

    # Shared SIGN lin_out, block-diagonalised over the two endpoints.
    w_so_bd = jax.scipy.linalg.block_diag(p['w_sign_out'], p['w_sign_out'])  # [192, 64]
    b_so_bd = jnp.concatenate([p['b_sign_out'], p['b_sign_out']], axis=-1)   # [1, 64]

    # Small-matrix slab: rows 0:DIM = w_label, rows DIM:DIM+H = w_feat_out.
    w_small = jnp.zeros((DIM + H, H), jnp.float32)
    w_small = w_small.at[0:DIM, 0:DIM].set(p['w_label'])
    w_small = w_small.at[DIM:DIM + H, 0:H].set(p['w_feat_out'])

    # Row slab: every [1,C] BN gamma/beta, remaining biases and final weight row.
    rowp = jnp.zeros((9, C_SGN), jnp.float32)
    rowp = rowp.at[0, 0:DIM].set(p['g_label'][0])
    rowp = rowp.at[1, 0:DIM].set(p['be_label'][0])
    rowp = rowp.at[2, :].set(g_bd[0])
    rowp = rowp.at[3, :].set(be_bd[0])
    rowp = rowp.at[4, 0:2 * H].set(b_so_bd[0])
    rowp = rowp.at[5, 0:H].set(p['g_feat'][0])
    rowp = rowp.at[6, 0:H].set(p['be_feat'][0])
    rowp = rowp.at[7, 0:DIM + H + 1].set(p['w_final'][:, 0])
    rowp = rowp.at[8, 0].set(p['g_ra'][0, 0])
    rowp = rowp.at[8, 1].set(p['be_ra'][0, 0])
    rowp = rowp.at[8, 2].set(p['b_final'][0, 0])
    # Note: b_label / b_sign / b_feat_out are intentionally NOT packed — they are
    # exact no-ops under training-mode BN (mean subtraction cancels them).
    return {'w_sgn_bd': w_sgn_bd, 'w_so_bd': w_so_bd,
            'w_small': w_small, 'rowp': rowp}


# ------------------------------ forward pass ---------------------------------
def buddy_forward(fp, sf, node_features, src_degree, dst_degree, RA):
    b = sf.shape[0]
    nf_flat = node_features.reshape(b, 2 * (K + 1) * F)        # free row-major view
    scal = jnp.stack([src_degree, dst_degree, RA], axis=1).astype(jnp.float32)
    return _pcall(
        buddy_kernel,
        (sf, nf_flat, scal,
         fp['w_sgn_bd'], fp['w_so_bd'], fp['w_small'], fp['rowp']),
        jax.ShapeDtypeStruct((b, 1), jnp.float32))


# ------------------------------ pure-JAX reference ----------------------------
def buddy_reference(p, sf, node_features, src_degree, dst_degree, RA):
    b = sf.shape[0]
    norm = jnp.sqrt(src_degree * dst_degree).reshape(b, 1)
    normed = jnp.where(norm > 0.0, sf / norm, 0.0)
    x = jnp.concatenate([sf, normed], axis=1)
    x = jnp.maximum(_bn_train(x @ p['w_label'] + p['b_label'],
                              p['g_label'], p['be_label']), 0.0)
    hs = ([], [])
    for k in range(K + 1):
        xk = node_features[:, :, k * F:(k + 1) * F]
        for s in range(2):
            h = xk[:, s, :] @ p['w_sign'][k] + p['b_sign'][k]
            h = jnp.maximum(_bn_train(h, p['g_sign'][k], p['be_sign'][k]), 0.0)
            hs[s].append(h)
    h0 = jnp.concatenate(hs[0], -1) @ p['w_sign_out'] + p['b_sign_out']
    h1 = jnp.concatenate(hs[1], -1) @ p['w_sign_out'] + p['b_sign_out']
    z = h0 * h1
    z = z @ p['w_feat_out'] + p['b_feat_out']
    z = jnp.maximum(_bn_train(z, p['g_feat'], p['be_feat']), 0.0)
    ra = _bn_train(RA.reshape(b, 1), p['g_ra'], p['be_ra'])
    full = jnp.concatenate([x, z, ra], axis=1)
    return full @ p['w_final'] + p['b_final']


# ----------------------------------- main -------------------------------------
if __name__ == "__main__":
    key = jax.random.PRNGKey(0)
    kp, kd = jax.random.split(key)
    params = init_params(kp)
    fused = fuse_params(params)

    ks = jax.random.split(kd, 5)
    sf = jax.random.uniform(ks[0], (B, L), jnp.float32)
    node_features = jax.random.normal(ks[1], (B, 2, (K + 1) * F), jnp.float32)
    src_degree = jax.random.randint(ks[2], (B,), 1, 10).astype(jnp.float32)
    dst_degree = jax.random.randint(ks[3], (B,), 1, 10).astype(jnp.float32)
    dst_degree = dst_degree.at[0].set(0.0)   # exercise divide-by-zero handling
    RA = jax.random.uniform(ks[4], (B,), jnp.float32)

    out = buddy_forward(fused, sf, node_features, src_degree, dst_degree, RA)
    out = jax.block_until_ready(out)

    ref = buddy_reference(params, sf, node_features, src_degree, dst_degree, RA)
    assert out.shape == (B, 1)
    assert bool(jnp.allclose(out, ref, rtol=2e-3, atol=2e-3)), (out, ref)
    print("KERNEL_OK")
</pallas_src>

<mosaic_0001>
module attributes {stable_mosaic.version = 11 : i64} {
  func.func @buddy_kernel(%arg0: memref<8x8xf32, #tpu.memory_space<vmem>>, %arg1: memref<8x96xf32, #tpu.memory_space<vmem>>, %arg2: memref<8x3xf32, #tpu.memory_space<vmem>>, %arg3: memref<96x192xf32, #tpu.memory_space<vmem>>, %arg4: memref<192x64xf32, #tpu.memory_space<vmem>>, %arg5: memref<48x32xf32, #tpu.memory_space<vmem>>, %arg6: memref<9x192xf32, #tpu.memory_space<vmem>>, %arg7: memref<8x1xf32, #tpu.memory_space<vmem>>) attributes {dimension_semantics = [], scalar_prefetch = 0 : i64, scratch_operands = 0 : i64, tpu.core_type = #tpu.core_type<tc>} {
    %c0 = arith.constant 0 : index
    %c0_0 = arith.constant 0 : index
    %0 = vector.load %arg6[%c0, %c0_0] : memref<9x192xf32, #tpu.memory_space<vmem>>, vector<1x16xf32>
    %c1 = arith.constant 1 : index
    %c0_1 = arith.constant 0 : index
    %1 = vector.load %arg6[%c1, %c0_1] : memref<9x192xf32, #tpu.memory_space<vmem>>, vector<1x16xf32>
    %c2 = arith.constant 2 : index
    %c0_2 = arith.constant 0 : index
    %2 = vector.load %arg6[%c2, %c0_2] : memref<9x192xf32, #tpu.memory_space<vmem>>, vector<1x192xf32>
    %c3 = arith.constant 3 : index
    %c0_3 = arith.constant 0 : index
    %3 = vector.load %arg6[%c3, %c0_3] : memref<9x192xf32, #tpu.memory_space<vmem>>, vector<1x192xf32>
    %c4 = arith.constant 4 : index
    %c0_4 = arith.constant 0 : index
    %4 = vector.load %arg6[%c4, %c0_4] : memref<9x192xf32, #tpu.memory_space<vmem>>, vector<1x64xf32>
    %c5 = arith.constant 5 : index
    %c0_5 = arith.constant 0 : index
    %5 = vector.load %arg6[%c5, %c0_5] : memref<9x192xf32, #tpu.memory_space<vmem>>, vector<1x32xf32>
    %c6 = arith.constant 6 : index
    %c0_6 = arith.constant 0 : index
    %6 = vector.load %arg6[%c6, %c0_6] : memref<9x192xf32, #tpu.memory_space<vmem>>, vector<1x32xf32>
    %c7 = arith.constant 7 : index
    %c0_7 = arith.constant 0 : index
    %7 = vector.load %arg6[%c7, %c0_7] : memref<9x192xf32, #tpu.memory_space<vmem>>, vector<1x16xf32>
    %c7_8 = arith.constant 7 : index
    %c16 = arith.constant 16 : index
    %8 = vector.load %arg6[%c7_8, %c16] : memref<9x192xf32, #tpu.memory_space<vmem>>, vector<1x32xf32>
    %c7_9 = arith.constant 7 : index
    %c48 = arith.constant 48 : index
    %9 = vector.load %arg6[%c7_9, %c48] : memref<9x192xf32, #tpu.memory_space<vmem>>, vector<1x1xf32>
    %c8 = arith.constant 8 : index
    %c0_10 = arith.constant 0 : index
    %10 = vector.load %arg6[%c8, %c0_10] : memref<9x192xf32, #tpu.memory_space<vmem>>, vector<1x3xf32>
    %11 = vector.extract_strided_slice %10 {offsets = [0, 0], sizes = [1, 1], strides = [1, 1]} : vector<1x3xf32> to vector<1x1xf32>
    %12 = vector.extract_strided_slice %10 {offsets = [0, 1], sizes = [1, 1], strides = [1, 1]} : vector<1x3xf32> to vector<1x1xf32>
    %13 = vector.extract_strided_slice %10 {offsets = [0, 2], sizes = [1, 1], strides = [1, 1]} : vector<1x3xf32> to vector<1x1xf32>
    %c0_11 = arith.constant 0 : index
    %c0_12 = arith.constant 0 : index
    %14 = vector.load %arg0[%c0_11, %c0_12] : memref<8x8xf32, #tpu.memory_space<vmem>>, vector<8x8xf32>
    %c0_13 = arith.constant 0 : index
    %c0_14 = arith.constant 0 : index
    %15 = vector.load %arg2[%c0_13, %c0_14] : memref<8x3xf32, #tpu.memory_space<vmem>>, vector<8x3xf32>
    %16 = vector.extract_strided_slice %15 {offsets = [0, 0], sizes = [8, 1], strides = [1, 1]} : vector<8x3xf32> to vector<8x1xf32>
    %17 = vector.extract_strided_slice %15 {offsets = [0, 1], sizes = [8, 1], strides = [1, 1]} : vector<8x3xf32> to vector<8x1xf32>
    %18 = arith.mulf %16, %17 : vector<8x1xf32>
    %19 = math.sqrt %18 : vector<8x1xf32>
    %cst = arith.constant 0.000000e+00 : f32
    %20 = vector.broadcast %cst : f32 to vector<8x1xf32>
    %21 = arith.cmpf ogt, %19, %20 : vector<8x1xf32>
    %cst_15 = arith.constant 1.000000e+00 : f32
    %22 = vector.broadcast %cst_15 : f32 to vector<8x1xf32>
    %23 = arith.select %21, %19, %22 : vector<8x1xi1>, vector<8x1xf32>
    %cst_16 = arith.constant 0.000000e+00 : f32
    %24 = vector.broadcast %cst_16 : f32 to vector<8x1xf32>
    %25 = arith.cmpf ogt, %19, %24 : vector<8x1xf32>
    %26 = vector.broadcast %23 : vector<8x1xf32> to vector<8x8xf32>
    %27 = arith.divf %14, %26 : vector<8x8xf32>
    %cst_17 = arith.constant 0.000000e+00 : f32
    %28 = vector.shape_cast %25 : vector<8x1xi1> to vector<8x1xi1>
    %29 = vector.broadcast %28 : vector<8x1xi1> to vector<8x8xi1>
    %30 = vector.broadcast %cst_17 : f32 to vector<8x8xf32>
    %31 = arith.select %29, %27, %30 : vector<8x8xi1>, vector<8x8xf32>
    %c0_18 = arith.constant 0 : index
    %c0_19 = arith.constant 0 : index
    %32 = vector.load %arg5[%c0_18, %c0_19] : memref<48x32xf32, #tpu.memory_space<vmem>>, vector<8x16xf32>
    %cst_20 = arith.constant dense<0.000000e+00> : vector<8x16xf32>
    %33 = tpu.matmul %14, %32, %cst_20 {dimension_numbers = #tpu.dot_dimension_numbers<[1], [0], [0], [1], [0, 0, 1, 1], [], []>} : vector<8x8xf32>, vector<8x16xf32>, vector<8x16xf32> -> vector<8x16xf32>
    %c8_21 = arith.constant 8 : index
    %c0_22 = arith.constant 0 : index
    %34 = vector.load %arg5[%c8_21, %c0_22] : memref<48x32xf32, #tpu.memory_space<vmem>>, vector<8x16xf32>
    %cst_23 = arith.constant dense<0.000000e+00> : vector<8x16xf32>
    %35 = tpu.matmul %31, %34, %cst_23 {dimension_numbers = #tpu.dot_dimension_numbers<[1], [0], [0], [1], [0, 0, 1, 1], [], []>} : vector<8x8xf32>, vector<8x16xf32>, vector<8x16xf32> -> vector<8x16xf32>
    %36 = arith.addf %33, %35 : vector<8x16xf32>
    %cst_24 = arith.constant dense<0.000000e+00> : vector<16xf32>
    %37 = vector.multi_reduction <add>, %36, %cst_24 [0] : vector<8x16xf32> to vector<16xf32>
    %38 = vector.shape_cast %37 : vector<16xf32> to vector<1x16xf32>
    %cst_25 = arith.constant 8.000000e+00 : f32
    %39 = vector.broadcast %cst_25 : f32 to vector<1x16xf32>
    %40 = arith.divf %38, %39 : vector<1x16xf32>
    %41 = vector.broadcast %40 : vector<1x16xf32> to vector<8x16xf32>
    %42 = arith.subf %36, %41 : vector<8x16xf32>
    %43 = arith.mulf %42, %42 : vector<8x16xf32>
    %cst_26 = arith.constant dense<0.000000e+00> : vector<16xf32>
    %44 = vector.multi_reduction <add>, %43, %cst_26 [0] : vector<8x16xf32> to vector<16xf32>
    %45 = vector.shape_cast %44 : vector<16xf32> to vector<1x16xf32>
    %cst_27 = arith.constant 8.000000e+00 : f32
    %46 = vector.broadcast %cst_27 : f32 to vector<1x16xf32>
    %47 = arith.divf %45, %46 : vector<1x16xf32>
    %48 = vector.broadcast %40 : vector<1x16xf32> to vector<8x16xf32>
    %49 = arith.subf %36, %48 : vector<8x16xf32>
    %cst_28 = arith.constant 9.99999974E-6 : f32
    %50 = vector.broadcast %cst_28 : f32 to vector<1x16xf32>
    %51 = arith.addf %47, %50 : vector<1x16xf32>
    %52 = math.rsqrt %51 : vector<1x16xf32>
    %53 = vector.broadcast %52 : vector<1x16xf32> to vector<8x16xf32>
    %54 = arith.mulf %49, %53 : vector<8x16xf32>
    %55 = vector.broadcast %0 : vector<1x16xf32> to vector<8x16xf32>
    %56 = arith.mulf %54, %55 : vector<8x16xf32>
    %57 = vector.broadcast %1 : vector<1x16xf32> to vector<8x16xf32>
    %58 = arith.addf %56, %57 : vector<8x16xf32>
    %cst_29 = arith.constant 0.000000e+00 : f32
    %59 = vector.broadcast %cst_29 : f32 to vector<8x16xf32>
    %60 = arith.maximumf %58, %59 : vector<8x16xf32>
    %c0_30 = arith.constant 0 : index
    %c0_31 = arith.constant 0 : index
    %61 = vector.load %arg1[%c0_30, %c0_31] : memref<8x96xf32, #tpu.memory_space<vmem>>, vector<8x96xf32>
    %c0_32 = arith.constant 0 : index
    %c0_33 = arith.constant 0 : index
    %62 = vector.load %arg3[%c0_32, %c0_33] : memref<96x192xf32, #tpu.memory_space<vmem>>, vector<96x192xf32>
    %cst_34 = arith.constant dense<0.000000e+00> : vector<8x192xf32>
    %63 = tpu.matmul %61, %62, %cst_34 {dimension_numbers = #tpu.dot_dimension_numbers<[1], [0], [0], [1], [0, 0, 1, 1], [], []>} : vector<8x96xf32>, vector<96x192xf32>, vector<8x192xf32> -> vector<8x192xf32>
    %cst_35 = arith.constant dense<0.000000e+00> : vector<192xf32>
    %64 = vector.multi_reduction <add>, %63, %cst_35 [0] : vector<8x192xf32> to vector<192xf32>
    %65 = vector.shape_cast %64 : vector<192xf32> to vector<1x192xf32>
    %cst_36 = arith.constant 8.000000e+00 : f32
    %66 = vector.broadcast %cst_36 : f32 to vector<1x192xf32>
    %67 = arith.divf %65, %66 : vector<1x192xf32>
    %68 = vector.broadcast %67 : vector<1x192xf32> to vector<8x192xf32>
    %69 = arith.subf %63, %68 : vector<8x192xf32>
    %70 = arith.mulf %69, %69 : vector<8x192xf32>
    %cst_37 = arith.constant dense<0.000000e+00> : vector<192xf32>
    %71 = vector.multi_reduction <add>, %70, %cst_37 [0] : vector<8x192xf32> to vector<192xf32>
    %72 = vector.shape_cast %71 : vector<192xf32> to vector<1x192xf32>
    %cst_38 = arith.constant 8.000000e+00 : f32
    %73 = vector.broadcast %cst_38 : f32 to vector<1x192xf32>
    %74 = arith.divf %72, %73 : vector<1x192xf32>
    %75 = vector.broadcast %67 : vector<1x192xf32> to vector<8x192xf32>
    %76 = arith.subf %63, %75 : vector<8x192xf32>
    %cst_39 = arith.constant 9.99999974E-6 : f32
    %77 = vector.broadcast %cst_39 : f32 to vector<1x192xf32>
    %78 = arith.addf %74, %77 : vector<1x192xf32>
    %79 = math.rsqrt %78 : vector<1x192xf32>
    %80 = vector.broadcast %79 : vector<1x192xf32> to vector<8x192xf32>
    %81 = arith.mulf %76, %80 : vector<8x192xf32>
    %82 = vector.broadcast %2 : vector<1x192xf32> to vector<8x192xf32>
    %83 = arith.mulf %81, %82 : vector<8x192xf32>
    %84 = vector.broadcast %3 : vector<1x192xf32> to vector<8x192xf32>
    %85 = arith.addf %83, %84 : vector<8x192xf32>
    %cst_40 = arith.constant 0.000000e+00 : f32
    %86 = vector.broadcast %cst_40 : f32 to vector<8x192xf32>
    %87 = arith.maximumf %85, %86 : vector<8x192xf32>
    %c0_41 = arith.constant 0 : index
    %c0_42 = arith.constant 0 : index
    %88 = vector.load %arg4[%c0_41, %c0_42] : memref<192x64xf32, #tpu.memory_space<vmem>>, vector<192x64xf32>
    %cst_43 = arith.constant dense<0.000000e+00> : vector<8x64xf32>
    %89 = tpu.matmul %87, %88, %cst_43 {dimension_numbers = #tpu.dot_dimension_numbers<[1], [0], [0], [1], [0, 0, 1, 1], [], []>} : vector<8x192xf32>, vector<192x64xf32>, vector<8x64xf32> -> vector<8x64xf32>
    %90 = vector.broadcast %4 : vector<1x64xf32> to vector<8x64xf32>
    %91 = arith.addf %89, %90 : vector<8x64xf32>
    %92 = vector.extract_strided_slice %91 {offsets = [0, 0], sizes = [8, 32], strides = [1, 1]} : vector<8x64xf32> to vector<8x32xf32>
    %93 = vector.extract_strided_slice %91 {offsets = [0, 32], sizes = [8, 32], strides = [1, 1]} : vector<8x64xf32> to vector<8x32xf32>
    %94 = arith.mulf %92, %93 : vector<8x32xf32>
    %c16_44 = arith.constant 16 : index
    %c0_45 = arith.constant 0 : index
    %95 = vector.load %arg5[%c16_44, %c0_45] : memref<48x32xf32, #tpu.memory_space<vmem>>, vector<32x32xf32>
    %cst_46 = arith.constant dense<0.000000e+00> : vector<8x32xf32>
    %96 = tpu.matmul %94, %95, %cst_46 {dimension_numbers = #tpu.dot_dimension_numbers<[1], [0], [0], [1], [0, 0, 1, 1], [], []>} : vector<8x32xf32>, vector<32x32xf32>, vector<8x32xf32> -> vector<8x32xf32>
    %cst_47 = arith.constant dense<0.000000e+00> : vector<32xf32>
    %97 = vector.multi_reduction <add>, %96, %cst_47 [0] : vector<8x32xf32> to vector<32xf32>
    %98 = vector.shape_cast %97 : vector<32xf32> to vector<1x32xf32>
    %cst_48 = arith.constant 8.000000e+00 : f32
    %99 = vector.broadcast %cst_48 : f32 to vector<1x32xf32>
    %100 = arith.divf %98, %99 : vector<1x32xf32>
    %101 = vector.broadcast %100 : vector<1x32xf32> to vector<8x32xf32>
    %102 = arith.subf %96, %101 : vector<8x32xf32>
    %103 = arith.mulf %102, %102 : vector<8x32xf32>
    %cst_49 = arith.constant dense<0.000000e+00> : vector<32xf32>
    %104 = vector.multi_reduction <add>, %103, %cst_49 [0] : vector<8x32xf32> to vector<32xf32>
    %105 = vector.shape_cast %104 : vector<32xf32> to vector<1x32xf32>
    %cst_50 = arith.constant 8.000000e+00 : f32
    %106 = vector.broadcast %cst_50 : f32 to vector<1x32xf32>
    %107 = arith.divf %105, %106 : vector<1x32xf32>
    %108 = vector.broadcast %100 : vector<1x32xf32> to vector<8x32xf32>
    %109 = arith.subf %96, %108 : vector<8x32xf32>
    %cst_51 = arith.constant 9.99999974E-6 : f32
    %110 = vector.broadcast %cst_51 : f32 to vector<1x32xf32>
    %111 = arith.addf %107, %110 : vector<1x32xf32>
    %112 = math.rsqrt %111 : vector<1x32xf32>
    %113 = vector.broadcast %112 : vector<1x32xf32> to vector<8x32xf32>
    %114 = arith.mulf %109, %113 : vector<8x32xf32>
    %115 = vector.broadcast %5 : vector<1x32xf32> to vector<8x32xf32>
    %116 = arith.mulf %114, %115 : vector<8x32xf32>
    %117 = vector.broadcast %6 : vector<1x32xf32> to vector<8x32xf32>
    %118 = arith.addf %116, %117 : vector<8x32xf32>
    %cst_52 = arith.constant 0.000000e+00 : f32
    %119 = vector.broadcast %cst_52 : f32 to vector<8x32xf32>
    %120 = arith.maximumf %118, %119 : vector<8x32xf32>
    %121 = vector.extract_strided_slice %15 {offsets = [0, 2], sizes = [8, 1], strides = [1, 1]} : vector<8x3xf32> to vector<8x1xf32>
    %cst_53 = arith.constant dense<0.000000e+00> : vector<1xf32>
    %122 = vector.multi_reduction <add>, %121, %cst_53 [0] : vector<8x1xf32> to vector<1xf32>
    %123 = vector.shape_cast %122 : vector<1xf32> to vector<1x1xf32>
    %cst_54 = arith.constant 8.000000e+00 : f32
    %124 = vector.broadcast %cst_54 : f32 to vector<1x1xf32>
    %125 = arith.divf %123, %124 : vector<1x1xf32>
    %126 = vector.broadcast %125 : vector<1x1xf32> to vector<8x1xf32>
    %127 = arith.subf %121, %126 : vector<8x1xf32>
    %128 = arith.mulf %127, %127 : vector<8x1xf32>
    %cst_55 = arith.constant dense<0.000000e+00> : vector<1xf32>
    %129 = vector.multi_reduction <add>, %128, %cst_55 [0] : vector<8x1xf32> to vector<1xf32>
    %130 = vector.shape_cast %129 : vector<1xf32> to vector<1x1xf32>
    %cst_56 = arith.constant 8.000000e+00 : f32
    %131 = vector.broadcast %cst_56 : f32 to vector<1x1xf32>
    %132 = arith.divf %130, %131 : vector<1x1xf32>
    %133 = vector.broadcast %125 : vector<1x1xf32> to vector<8x1xf32>
    %134 = arith.subf %121, %133 : vector<8x1xf32>
    %cst_57 = arith.constant 9.99999974E-6 : f32
    %135 = vector.broadcast %cst_57 : f32 to vector<1x1xf32>
    %136 = arith.addf %132, %135 : vector<1x1xf32>
    %137 = math.rsqrt %136 : vector<1x1xf32>
    %138 = vector.broadcast %137 : vector<1x1xf32> to vector<8x1xf32>
    %139 = arith.mulf %134, %138 : vector<8x1xf32>
    %140 = vector.broadcast %11 : vector<1x1xf32> to vector<8x1xf32>
    %141 = arith.mulf %139, %140 : vector<8x1xf32>
    %142 = vector.broadcast %12 : vector<1x1xf32> to vector<8x1xf32>
    %143 = arith.addf %141, %142 : vector<8x1xf32>
    %144 = vector.broadcast %7 : vector<1x16xf32> to vector<8x16xf32>
    %145 = arith.mulf %60, %144 : vector<8x16xf32>
    %cst_58 = arith.constant dense<0.000000e+00> : vector<8xf32>
    %146 = vector.multi_reduction <add>, %145, %cst_58 [1] : vector<8x16xf32> to vector<8xf32>
    %147 = vector.shape_cast %146 : vector<8xf32> to vector<8x1xf32>
    %148 = vector.broadcast %8 : vector<1x32xf32> to vector<8x32xf32>
    %149 = arith.mulf %120, %148 : vector<8x32xf32>
    %cst_59 = arith.constant dense<0.000000e+00> : vector<8xf32>
    %150 = vector.multi_reduction <add>, %149, %cst_59 [1] : vector<8x32xf32> to vector<8xf32>
    %151 = vector.shape_cast %150 : vector<8xf32> to vector<8x1xf32>
    %152 = arith.addf %147, %151 : vector<8x1xf32>
    %153 = vector.broadcast %9 : vector<1x1xf32> to vector<8x1xf32>
    %154 = arith.mulf %143, %153 : vector<8x1xf32>
    %155 = arith.addf %152, %154 : vector<8x1xf32>
    %156 = vector.broadcast %13 : vector<1x1xf32> to vector<8x1xf32>
    %157 = arith.addf %155, %156 : vector<8x1xf32>
    %c0_60 = arith.constant 0 : index
    %c0_61 = arith.constant 0 : index
    %158 = vector.load %arg7[%c0_60, %c0_61] : memref<8x1xf32, #tpu.memory_space<vmem>>, vector<8x1xf32>
    tpu.vector_store %arg7[%c0_60, %c0_61], %157 {strides = array<i32>} : memref<8x1xf32, #tpu.memory_space<vmem>>, vector<8x1xf32>,
    return
  }
}

</mosaic_0001>

<bundles_post_ra>
// kernel: tpu_custom_call.1
= control target key start
LH: loop header
LB: loop body
LE: loop exit
PB: predicated region body
PF: predicated region fallthrough
CT: control target
= control target key end

     0   :  { %v806_v1 = vmov 0   ;;  %s807_s26 = smov 127   ;;  %v808_v11 = vmov 0.0   ;;  %vm809_vm3 = vmmov 0   ;;  %vm68_vm4 = vcmask 64512   ;;  %s811_s19 = smov 96   ;;  %s1104_s2 = inlined_call_operand.vmem [shape: f32[8,3], index: 2, kind: input, shape index: {}]   ;;  %s1105_s5 = inlined_call_operand.vmem [shape: f32[48,32], index: 5, kind: input, shape index: {}]   ;;  %s1106_s0 = inlined_call_operand.vmem [shape: f32[8,8], index: 0, kind: input, shape index: {}]   ;;  %s1107_s3 = inlined_call_operand.vmem [shape: f32[96,192], index: 3, kind: input, shape index: {}]   ;;  %s1108_s1 = inlined_call_operand.vmem [shape: f32[8,96], index: 1, kind: input, shape index: {}]   ;;  %s1109_s4 = inlined_call_operand.vmem [shape: f32[192,64], index: 4, kind: input, shape index: {}]   ;;  %s1110_s6 = inlined_call_operand.vmem [shape: f32[9,192], index: 6, kind: input, shape index: {}]   ;;  %s1111_s7 = inlined_call_operand.vmem [shape: f32[8,1], index: 7, kind: output, shape index: {}]  }
   0x1   :  { %v860_v0 = vld [vmem:[%s1104_s2] sm:$0xff]  ;;  %791 = vset.pattern.permute.xlu1 %v806_v1  ;;  %790 = vset.pattern.permute.xlu0 %v806_v1  ;;  %v67_v12 = vld [vmem:[%s1105_s5 + $0x8] sm:$0xff]  ;;  %v245_v17 = vld [vmem:[%s1107_s3 + $0x18] sm:$0xff]  ;;  %vm266_vm6 = vcmask 785408   ;;  %v810_v60 = vmov 0.0|0.0   ;;  %vm215_vm7 = vcmask 130048  }
   0x2   :  { %40 = vrot.lane.b32.xlu0 %v860_v0, %s807_s26  ;;  %690 = vmatprep.subr.mxu1 %v808_v11  ;;  %v37_v14 = vld [vmem:[%s1106_s0] sm:$0xff]  ;;  %v243_v16 = vld [vmem:[%s1107_s3 + $0x8] sm:$0xff]  ;;  %v244_v24 = vld [vmem:[%s1107_s3 + $0x10] sm:$0xff]  ;;  %vm347_vm8 = vcmask 523264   ;;  %s812_s20 = smov 112   ;;  %vm516_vm9 = vcmask 261120  }
   0x3   :  { %692 = vmatprep.mubr.msk.f32.mxu1 %vm809_vm3, %v808_v11  ;;  %691 = vmatpush3.msra.mxu1 %v67_v12  ;;  %v66_v20 = vld [vmem:[%s1105_s5] sm:$0xff]  ;;  %v711_v21 = vpack.c.bf16 %v245_v17, %v243_v16  ;;  %v247_v25 = vld [vmem:[%s1107_s3 + $0x28] sm:$0xff]  ;;  %v249_v26 = vld [vmem:[%s1107_s3 + $0x38] sm:$0xff]  ;;  %s813_s22 = smov 2   ;;  %s814_s23 = smov 82   ;;  %vm614_vm10 = vcmask 23568  }
   0x4   :  { %695 = vmatprep.subr.mxu1 %v808_v11  ;;  %v242_v23 = vld [vmem:[%s1107_s3] sm:$0xff]  ;;  %v715_v28 = vpack.c.bf16 %v249_v26, %v247_v25  ;;  %v248_v30 = vld [vmem:[%s1107_s3 + $0x30] sm:$0xff]  ;;  %v251_v31 = vld [vmem:[%s1107_s3 + $0x48] sm:$0xff]  ;;  %735 = vmatprep.subr.bf16.mxu0 %v810_v60  ;;  %s815_s2 = smov 1   ;;  %vm668_vm11 = vcmask 7168  }
   0x5   :  { %v713_v27 = vpack.c.bf16 %v244_v24, %v242_v23  ;;  %v246_v29 = vld [vmem:[%s1107_s3 + $0x20] sm:$0xff]  ;;  %v253_v32 = vld [vmem:[%s1107_s3 + $0x58] sm:$0xff]  ;;  %v252_v36 = vld [vmem:[%s1107_s3 + $0x50] sm:$0xff] }
   0x6   :  { %v717_v33 = vpack.c.bf16 %v248_v30, %v246_v29  ;;  %v719_v34 = vpack.c.bf16 %v253_v32, %v251_v31  ;;  %v250_v35 = vld [vmem:[%s1107_s3 + $0x40] sm:$0xff]  ;;  %v255_v37 = vld [vmem:[%s1107_s3 + $0x68] sm:$0xff]  ;;  %v257_v38 = vld [vmem:[%s1107_s3 + $0x78] sm:$0xff] }
   0x7   :  { %v721_v39 = vpack.c.bf16 %v252_v36, %v250_v35  ;;  %v723_v40 = vpack.c.bf16 %v257_v38, %v255_v37  ;;  %v254_v41 = vld [vmem:[%s1107_s3 + $0x60] sm:$0xff]  ;;  %v256_v42 = vld [vmem:[%s1107_s3 + $0x70] sm:$0xff]  ;;  %v259_v43 = vld [vmem:[%s1107_s3 + $0x88] sm:$0xff] }
   0x8   :  { %v261_v44 = vld [vmem:[%s1107_s3 + $0x98] sm:$0xff]  ;;  %v725_v45 = vpack.c.bf16 %v256_v42, %v254_v41  ;;  %v258_v47 = vld [vmem:[%s1107_s3 + $0x80] sm:$0xff]  ;;  %v260_v48 = vld [vmem:[%s1107_s3 + $0x90] sm:$0xff] }
   0x9   :  { %v727_v46 = vpack.c.bf16 %v261_v44, %v259_v43  ;;  %v263_v49 = vld [vmem:[%s1107_s3 + $0xa8] sm:$0xff]  ;;  %v265_v50 = vld [vmem:[%s1107_s3 + $0xb8] sm:$0xff]  ;;  %v729_v51 = vpack.c.bf16 %v260_v48, %v258_v47  ;;  %v262_v53 = vld [vmem:[%s1107_s3 + $0xa0] sm:$0xff] }
   0xa   :  { %v731_v52 = vpack.c.bf16 %v265_v50, %v263_v49  ;;  %v264_v54 = vld [vmem:[%s1107_s3 + $0xb0] sm:$0xff]  ;;  %v241_v56 = vld [vmem:[%s1108_s1] sm:$0xff]  ;;  %v411_v58 = vld [vmem:[%s1109_s4 + $0x8] sm:$0xff] }
   0xb   :  { %v733_v55 = vpack.c.bf16 %v264_v54, %v262_v53  ;;  %v410_v57 = vld [vmem:[%s1109_s4] sm:$0xff]  ;;  %v412_v61 = vld [vmem:[%s1109_s4 + $0x10] sm:$0xff]  ;;  %v413_v62 = vld [vmem:[%s1109_s4 + $0x18] sm:$0xff] }
   0xc   :  { %v736_v59 = vpack.c.bf16 %v411_v58, %v410_v57  ;;  %v739_v63 = vpack.c.bf16 %v413_v62, %v412_v61  ;;  %v424_v16 = vld [vmem:[%s1109_s4 + $0x70] sm:$0xff]  ;;  %v425_v17 = vld [vmem:[%s1109_s4 + $0x78] sm:$0xff]  ;;  %v430_v25 = vld [vmem:[%s1109_s4 + $0xa0] sm:$0xff] }
   0xd   :  { %v429_v23 = vld [vmem:[%s1109_s4 + $0x98] sm:$0xff]  ;;  %v431_v26 = vld [vmem:[%s1109_s4 + $0xa8] sm:$0xff] }
   0xe   :  { %737 = vmatpush1.bf16.msra.mxu0 %v736_v59  ;;  %v433_v29 = vld [vmem:[%s1109_s4 + $0xb8] sm:$0xff] }
   0xf   :  { %738 = vmatprep.subr.bf16.mxu0 %v810_v60 }
  0x12   :  { %740 = vmatpush1.bf16.msra.mxu0 %v739_v63 }
  0x13   :  { %741 = vmatprep.subr.bf16.mxu0 %v810_v60 }
  0x74   :  { %v41_v2 = vpop.permute.xlu0 %40 }
  0x75   :  { %v43_v3 = vmul.f32 %v41_v2, %v860_v0  ;;  %v415_v2 = vld [vmem:[%s1109_s4 + $0x28] sm:$0xff] }
  0x77   :  { %792 = vrsqrt.f32 %v43_v3  ;;  %vm46_vm0 = vcmp.eq.f32.partialorder %v43_v3, inf  ;;  %v49_v6 = vand.u32 2147483648, %v43_v3  ;;  %vm48_vm1 = vcmp.eq.f32.partialorder %v43_v3, 0.0 }
  0x81   :  { %v793_v4 = vpop.eup %792 }
  0x82   :  { %v45_v5 = vmul.f32 %v793_v4, %v43_v3  ;;  %v416_v4 = vld [vmem:[%s1109_s4 + $0x30] sm:$0xff] }
  0x84   :  { %v47_v7 = vsel %vm46_vm0, %v43_v3, %v45_v5  ;;  %v417_v5 = vld [vmem:[%s1109_s4 + $0x38] sm:$0xff] }
  0x85   :  { %v50_v8 = vsel %vm48_vm1, %v49_v6, %v47_v7  ;;  %v745_v6 = vpack.c.bf16 %v417_v5, %v416_v4  ;;  %v418_v7 = vld [vmem:[%s1109_s4 + $0x40] sm:$0xff] }
  0x86   :  { %vm51_vm2 = vcmp.gt.f32.partialorder %v50_v8, 0.0 }
  0x87   :  { %v60_v9 = vsel %vm51_vm2, 1, %v806_v1  ;;  %v52_v10 = vsel %vm51_vm2, %v50_v8, 1.0  ;;  %v414_v1 = vld [vmem:[%s1109_s4 + $0x20] sm:$0xff]  ;;  %v419_v8 = vld [vmem:[%s1109_s4 + $0x48] sm:$0xff] }
  0x88   :  { %62 = vperm.xlu1 %791, %v60_v9   ;;  %55 = vperm.xlu0 %790, %v52_v10   ;;  %v742_v3 = vpack.c.bf16 %v415_v2, %v414_v1  ;;  %v748_v9 = vpack.c.bf16 %v419_v8, %v418_v7  ;;  %v420_v10 = vld [vmem:[%s1109_s4 + $0x50] sm:$0xff] }
  0x8a   :  { %743 = vmatpush1.bf16.msra.mxu0 %v742_v3 }
  0x8b   :  { %744 = vmatprep.subr.bf16.mxu0 %v810_v60 }
  0x8e   :  { %746 = vmatpush1.bf16.msra.mxu0 %v745_v6 }
  0x8f   :  { %747 = vmatprep.subr.bf16.mxu0 %v810_v60 }
  0x92   :  { %749 = vmatpush1.bf16.msra.mxu0 %v748_v9 }
  0x93   :  { %750 = vmatprep.subr.bf16.mxu0 %v810_v60 }
 0x107   :  { %v56_v13 = vpop.permute.xlu0 %55  ;;  %v63_v15 = vpop.permute.xlu1 %62 }
 0x108   :  { %794 = vrcp.f32 %v56_v13  ;;  %vm64_vm5 = vcmp.eq.s32.totalorder %v63_v15, 1  ;;  %v422_v13 = vld [vmem:[%s1109_s4 + $0x60] sm:$0xff] }
 0x112   :  { %v795_v18 = vpop.eup %794 }
 0x113   :  { %v59_v19 = vmul.f32 %v795_v18, %v37_v14  ;;  %v757_v18 = vpack.c.bf16 %v425_v17, %v424_v16  ;;  %v26_v16 = vld [vmem:[%s1110_s6] ss:$0 sm:$0xff] }
 0x115   :  { %v65_v22 = vsel %vm64_vm5, %v59_v19, 0.0  ;;  %v426_v19 = vld [vmem:[%s1109_s4 + $0x80] sm:$0xff] }
 0x116   :  { %693 = vmatmul.mubr.msk.f32.vlgmr.msra.gmra.mrb[0].mxu1 %vm68_vm4, %v65_v22  ;;  %v428_v22 = vld [vmem:[%s1109_s4 + $0x90] sm:$0xff] }
 0x117   :  { %696 = vmatpush3.msra.mxu1 %v66_v20  ;;  %697 = vmatprep.mubr.msk.f32.mxu1 %vm809_vm3, %v808_v11  ;;  %v427_v20 = vld [vmem:[%s1109_s4 + $0x88] sm:$0xff]  ;;  %v763_v24 = vpack.c.bf16 %v429_v23, %v428_v22 }
 0x118   :  { %712 = vmatprep.subr.bf16.mxu1 %v711_v21  ;;  %v760_v21 = vpack.c.bf16 %v427_v20, %v426_v19 }
 0x11e   :  { %698 = vmatmul.mubr.msk.f32.vlgmr.msra.gmra.mrb[0].mxu1 %vm68_vm4, %v37_v14  ;;  %v423_v14 = vld [vmem:[%s1109_s4 + $0x68] sm:$0xff] }
 0x11f   :  { %714 = vmatpush1.bf16.msra.mxu1 %v713_v27  ;;  %334 = vmatprep.mubr.f32.mxu1 %v808_v11  ;;  %v754_v15 = vpack.c.bf16 %v423_v14, %v422_v13  ;;  %v766_v27 = vpack.c.bf16 %v431_v26, %v430_v25 }
 0x120   :  { %716 = vmatprep.subr.bf16.mxu1 %v715_v28  ;;  %v432_v28 = vld [vmem:[%s1109_s4 + $0xb0] sm:$0xff] }
 0x121   :  { %v769_v30 = vpack.c.bf16 %v433_v29, %v432_v28  ;;  %v35_v28 = vld [vmem:[%s1110_s6 + $0x7] ss:$0 sm:$0xff] }
 0x123   :  { %718 = vmatpush1.bf16.msra.mxu1 %v717_v33 }
 0x124   :  { %720 = vmatprep.subr.bf16.mxu1 %v719_v34 }
 0x127   :  { %722 = vmatpush1.bf16.msra.mxu1 %v721_v39 }
 0x128   :  { %724 = vmatprep.subr.bf16.mxu1 %v723_v40 }
 0x12b   :  { %726 = vmatpush1.bf16.msra.mxu1 %v725_v45 }
 0x12c   :  { %728 = vmatprep.subr.bf16.mxu1 %v727_v46 }
 0x12f   :  { %730 = vmatpush1.bf16.msra.mxu1 %v729_v51 }
 0x130   :  { %732 = vmatprep.subr.bf16.mxu1 %v731_v52 }
 0x133   :  { %734 = vmatpush1.bf16.msra.mxu1 %v733_v55 }
 0x134   :  { %771 = vmatprep.subr.bf16.mxu1 %v810_v60 }
 0x136   :  { %678 = vmatmul.mubr.msk.f32.vlgmr.msra.gmra.mrb[2].mxu1 %vm266_vm6, %v241_v56 }
 0x137   :  { %708 = vmatprep.mubr.msk.f32.mxu1 %vm809_vm3, %v808_v11  ;;  %v421_v11 = vld [vmem:[%s1109_s4 + $0x58] sm:$0xff] }
 0x138   :  { %v751_v12 = vpack.c.bf16 %v421_v11, %v420_v10 }
 0x13a   :  { %752 = vmatpush1.bf16.msra.mxu0 %v751_v12 }
 0x13b   :  { %753 = vmatprep.subr.bf16.mxu0 %v810_v60 }
 0x13e   :  { %755 = vmatpush1.bf16.msra.mxu0 %v754_v15 }
 0x13f   :  { %756 = vmatprep.subr.bf16.mxu0 %v810_v60 }
 0x142   :  { %758 = vmatpush1.bf16.msra.mxu0 %v757_v18 }
 0x143   :  { %759 = vmatprep.subr.bf16.mxu0 %v810_v60 }
 0x146   :  { %761 = vmatpush1.bf16.msra.mxu0 %v760_v21  ;;  %v27_v21 = vld [vmem:[%s1110_s6 + $0x1] ss:$0 sm:$0xff] }
 0x147   :  { %762 = vmatprep.subr.bf16.mxu0 %v810_v60 }
 0x14a   :  { %764 = vmatpush1.bf16.msra.mxu0 %v763_v24 }
 0x14b   :  { %765 = vmatprep.subr.bf16.mxu0 %v810_v60 }
 0x14e   :  { %767 = vmatpush1.bf16.msra.mxu0 %v766_v27 }
 0x14f   :  { %768 = vmatprep.subr.bf16.mxu0 %v810_v60 }
 0x152   :  { %770 = vmatpush1.bf16.msra.mxu0 %v769_v30 }
 0x1f1   :  { %v211_v31 = vpop.f32.mrb[0].mxu1 }
 0x1f2   :  { %v216_v32 = vsel %vm215_vm7, %v211_v31, 0.0  ;;  %v699_v33 = vpop.f32.mrb[1].mxu1 }
 0x1f3   :  { %v217_v34 = vrot.slane %v216_v32, 4 }
 0x1f5   :  { %v218_v35 = vadd.f32 %v217_v34, %v216_v32  ;;  %v383_v34 = vlaneseq }
 0x1f7   :  { %v219_v36 = vrot.slane %v218_v35, 2 }
 0x1f9   :  { %v220_v37 = vadd.f32 %v219_v36, %v218_v35 }
 0x1fb   :  { %v221_v38 = vrot.slane %v220_v37, 1 }
 0x1fd   :  { %v222_v39 = vadd.f32 %v221_v38, %v220_v37 }
 0x1ff   :  { %v224_v40 = vmul.f32 0.125, %v222_v39  ;;  %v384_v39 = vshrl.u32 %v383_v34, 7 }
 0x201   :  { %v225_v41 = vsub.f32 %v211_v31, %v224_v40  ;;  %v385_v40 = vsub.s32 0, %v384_v39 }
 0x203   :  { %v226_v42 = vmul.f32 %v225_v41, %v225_v41 }
 0x205   :  { %v227_v43 = vsel %vm215_vm7, %v226_v42, 0.0  ;;  %v389_v42 = vsub.s32 1, %v384_v39  ;;  %v615_v39 = vsel %vm614_vm10, %v860_v0, 0.0 }
 0x206   :  { %v228_v44 = vrot.slane %v227_v43, 4 }
 0x208   :  { %v229_v45 = vadd.f32 %v228_v44, %v227_v43 }
 0x209   :  { %v336_v46 = vpop.f32.mrb[2].mxu1 }
 0x20a   :  { %v230_v47 = vrot.slane %v229_v45, 2  ;;  %v341_v48 = vrot.slane %v336_v46, 4  ;;  %v338_v49 = vpop.f32.mrb[3].mxu1 }
 0x20b   :  { %v348_v50 = vsel %vm347_vm8, %v338_v49, 0.0 }
 0x20c   :  { %v231_v51 = vadd.f32 %v230_v47, %v229_v45  ;;  %v342_v52 = vadd.f32 %v341_v48, %v336_v46  ;;  %v349_v53 = vrot.slane %v348_v50, 4  ;;  %v675_v45 = vld [vmem:[%s1110_s6 + $0x3] ss:$8 sm:$0x3] }
 0x20e   :  { %v232_v54 = vrot.slane %v231_v51, 1  ;;  %v343_v55 = vrot.slane %v342_v52, 2  ;;  %v350_v56 = vadd.f32 %v349_v53, %v348_v50 }
 0x210   :  { %v233_v57 = vadd.f32 %v232_v54, %v231_v51  ;;  %v344_v58 = vadd.f32 %v343_v55, %v342_v52  ;;  %v351_v59 = vrot.slane %v350_v56, 2  ;;  %v403_v52 = vrot.slane %v675_v45, %v389_v42 }
 0x212   :  { %v234_v61 = vmul.f32 0.125, %v233_v57  ;;  %v345_v62 = vrot.slane %v344_v58, 1  ;;  %v352_v63 = vadd.f32 %v351_v59, %v350_v56  ;;  %v513_v59 = vld [vmem:[%s1105_s5 + $0x18] sm:$0xff] }
 0x214   :  { %v235_v1 = vadd.f32 1e-05, %v234_v61  ;;  %v346_v2 = vadd.f32 %v345_v62, %v344_v58  ;;  %v353_v3 = vrot.slane %v352_v63, 1  ;;  %v512_v58 = vld [vmem:[%s1105_s5 + $0x10] sm:$0xff]  ;;  %v514_v61 = vld [vmem:[%s1105_s5 + $0x20] sm:$0xff] }
 0x215   :  { %v772_v62 = vpack.c.bf16 %v513_v59, %v512_v58 }
 0x216   :  { %796 = vrsqrt.f32 %v235_v1  ;;  %v355_v4 = vmul.f32 0.125, %v346_v2  ;;  %v354_v5 = vadd.f32 %v353_v3, %v352_v63  ;;  %v515_v63 = vld [vmem:[%s1105_s5 + $0x28] sm:$0xff]  ;;  %v32_v2 = vld [vmem:[%s1110_s6 + $0x4] ss:$0 sm:$0xff] }
 0x217   :  { %773 = vmatpush3.bf16.msra.mxu1 %v772_v62  ;;  %v775_v1 = vpack.c.bf16 %v515_v63, %v514_v61 }
 0x218   :  { %v357_v6 = vsub.f32 %v336_v46, %v355_v4  ;;  %v356_v7 = vmul.f32 0.125, %v354_v5  ;;  %774 = vmatprep.subr.bf16.mxu1 %v810_v60  ;;  %v1085_v60 = vld [vmem:[%s1110_s6 + $0x10] ss:$0 sm:$0xff] }
 0x21a   :  { %v359_v8 = vmul.f32 %v357_v6, %v357_v6  ;;  %v358_v9 = vsub.f32 %v338_v49, %v356_v7  ;;  %v399_v49 = vrot.slane %v675_v45, %v385_v40 }
 0x21b   :  { %776 = vmatpush3.bf16.msra.mxu1 %v775_v1 }
 0x21c   :  { %v361_v10 = vrot.slane %v359_v8, 4  ;;  %v360_v11 = vmul.f32 %v358_v9, %v358_v9 }
 0x21e   :  { %v362_v12 = vadd.f32 %v361_v10, %v359_v8  ;;  %v367_v13 = vsel %vm347_vm8, %v360_v11, 0.0 }
 0x21f   :  { %v368_v14 = vrot.slane %v367_v13, 4 }
 0x220   :  { %v797_v15 = vpop.eup %796  ;;  %v363_v17 = vrot.slane %v362_v12, 2 }
 0x221   :  { %v237_v18 = vmul.f32 %v797_v15, %v225_v41  ;;  %v369_v19 = vadd.f32 %v368_v14, %v367_v13  ;;  %v674_v41 = vld [vmem:[%s1110_s6 + $0x2] ss:$8 sm:$0x3] }
 0x222   :  { %v364_v20 = vadd.f32 %v363_v17, %v362_v12  ;;  %v386_v43 = vrot.slane %v674_v41, %v385_v40  ;;  %v390_v47 = vrot.slane %v674_v41, %v389_v42  ;;  %v616_v40 = vrot.slane %v615_v39, 4 }
 0x223   :  { %v238_v22 = vmul.f32 %v237_v18, %v26_v16  ;;  %v370_v23 = vrot.slane %v369_v19, 2 }
 0x224   :  { %v365_v24 = vrot.slane %v364_v20, 1  ;;  %v617_v41 = vadd.f32 %v616_v40, %v615_v39 }
 0x225   :  { %v371_v25 = vadd.f32 %v370_v23, %v369_v19  ;;  %v239_v26 = vadd.f32 %v238_v22, %v27_v21 }
 0x226   :  { %v366_v27 = vadd.f32 %v365_v24, %v364_v20  ;;  %v618_v42 = vrot.slane %v617_v41, 2 }
 0x227   :  { %v372_v29 = vrot.slane %v371_v25, 1  ;;  %v240_v30 = vmax.f32 %v239_v26, 0.0 }
 0x228   :  { %v374_v31 = vmul.f32 0.125, %v366_v27 }
 0x229   :  { %v373_v32 = vadd.f32 %v372_v29, %v371_v25  ;;  %v645_v33 = vmul.f32 %v240_v30, %v35_v28  ;;  %v33_v30 = vld [vmem:[%s1110_s6 + $0x5] ss:$0 sm:$0xff] }
 0x22a   :  { %v376_v35 = vadd.f32 1e-05, %v374_v31 }
 0x22b   :  { %v375_v36 = vmul.f32 0.125, %v373_v32  ;;  %v646_v37 = vsel %vm215_vm7, %v645_v33, 0.0  ;;  %v34_v32 = vld [vmem:[%s1110_s6 + $0x6] ss:$0 sm:$0xff]  ;;  %s816_s6 = smov 126  }
 0x22c   :  { %798 = vrsqrt.f32 %v376_v35  ;;  %647 = vadd.xlane.f32.xlu0 %v646_v37 }
 0x22d   :  { %v377_v38 = vadd.f32 1e-05, %v375_v36 }
 0x22f   :  { %800 = vrsqrt.f32 %v377_v38 }
 0x236   :  { %v799_v44 = vpop.eup %798 }
 0x237   :  { %v380_v46 = vmul.f32 %v799_v44, %v357_v6 }
 0x239   :  { %v801_v48 = vpop.eup %800  ;;  %v393_v50 = vmul.f32 %v386_v43, %v380_v46  ;;  %v619_v43 = vadd.f32 %v618_v42, %v617_v41 }
 0x23a   :  { %v381_v51 = vmul.f32 %v801_v48, %v358_v9 }
 0x23b   :  { %v406_v54 = vadd.f32 %v399_v49, %v393_v50  ;;  %v620_v44 = vrot.slane %v619_v43, 1 }
 0x23c   :  { %v394_v53 = vmul.f32 %v390_v47, %v381_v51 }
 0x23d   :  { %v408_v57 = vmax.f32 %v406_v54, 0.0  ;;  %v621_v45 = vadd.f32 %v620_v44, %v619_v43 }
 0x23e   :  { %v407_v55 = vadd.f32 %v403_v52, %v394_v53 }
 0x23f   :  { %v622_v46 = vmul.f32 0.125, %v621_v45 }
 0x240   :  { %v409_v56 = vmax.f32 %v407_v55, 0.0 }
 0x241   :  { %v623_v47 = vsub.f32 %v860_v0, %v622_v46 }
 0x242   :  { %679 = vmatprep.mubr.msk.f32.mxu0 %vm347_vm8, %v409_v56  ;;  %637 = vrot.lane.b32.xlu0 %v1085_v60, %s813_s22 }
 0x243   :  { %502 = vmatmul.mubr.f32.vlgmr.msra.gmra.mrb[0].mxu0 %v408_v57  ;;  %v624_v48 = vmul.f32 %v623_v47, %v623_v47 }
 0x245   :  { %v625_v49 = vsel %vm614_vm10, %v624_v48, 0.0 }
 0x246   :  { %658 = vrot.lane.b32.xlu0 %v35_v28, %s814_s23  ;;  %v626_v50 = vrot.slane %v625_v49, 4 }
 0x248   :  { %v627_v51 = vadd.f32 %v626_v50, %v625_v49 }
 0x24a   :  { %v628_v52 = vrot.slane %v627_v51, 2 }
 0x24c   :  { %v629_v53 = vadd.f32 %v628_v52, %v627_v51 }
 0x24e   :  { %v630_v54 = vrot.slane %v629_v53, 1 }
 0x250   :  { %v631_v55 = vadd.f32 %v630_v54, %v629_v53 }
 0x252   :  { %v632_v56 = vmul.f32 0.125, %v631_v55 }
 0x254   :  { %v633_v57 = vadd.f32 1e-05, %v632_v56 }
 0x2b9   :  { %v648_v59 = vpop.xlane.xlu0 %647 }
 0x2bd   :  { %v638_v62 = vpop.permute.xlu0 %637 }
 0x316   :  { %v503_v3 = vpop.f32.mrb[0].mxu0 }
 0x317   :  { %v504_v4 = vadd.f32 %v503_v3, %v32_v2  ;;  %v505_v5 = vpop.f32.mrb[1].mxu0  ;;  %v659_v3 = vpop.permute.xlu0 %658 }
 0x319   :  { %508 = vrot.lane.b32.xlu1 %v504_v4, %s811_s19 }
 0x31d   :  { %650 = vrot.lane.b32.xlu1 %v35_v28, %s812_s20 }
 0x38b   :  { %v509_v6 = vpop.permute.xlu1 %508 }
 0x38c   :  { %v511_v7 = vmul.f32 %v509_v6, %v504_v4 }
 0x38e   :  { %709 = vmatmul.mubr.msk.f32.vlgmr.msra.gmra.mrb[4].mxu1 %vm516_vm9, %v511_v7 }
 0x38f   :  { %v651_v35 = vpop.permute.xlu1 %650 }
 0x461   :  { %v586_v8 = vpop.f32.mrb[4].mxu1 }
 0x462   :  { %v590_v9 = vsel %vm516_vm9, %v586_v8, 0.0  ;;  %v710_v10 = vpop.f32.mrb[5].mxu1 }
 0x463   :  { %v591_v11 = vrot.slane %v590_v9, 4 }
 0x465   :  { %v592_v12 = vadd.f32 %v591_v11, %v590_v9 }
 0x467   :  { %v593_v13 = vrot.slane %v592_v12, 2 }
 0x469   :  { %v594_v14 = vadd.f32 %v593_v13, %v592_v12 }
 0x46b   :  { %v595_v15 = vrot.slane %v594_v14, 1 }
 0x46d   :  { %v596_v16 = vadd.f32 %v595_v15, %v594_v14 }
 0x46f   :  { %v597_v17 = vmul.f32 0.125, %v596_v16 }
 0x471   :  { %v598_v18 = vsub.f32 %v586_v8, %v597_v17 }
 0x473   :  { %v599_v19 = vmul.f32 %v598_v18, %v598_v18 }
 0x475   :  { %v600_v20 = vsel %vm516_vm9, %v599_v19, 0.0 }
 0x476   :  { %v601_v21 = vrot.slane %v600_v20, 4 }
 0x478   :  { %v602_v22 = vadd.f32 %v601_v21, %v600_v20 }
 0x47a   :  { %v603_v23 = vrot.slane %v602_v22, 2 }
 0x47c   :  { %v604_v24 = vadd.f32 %v603_v23, %v602_v22 }
 0x47e   :  { %v605_v25 = vrot.slane %v604_v24, 1 }
 0x480   :  { %v606_v26 = vadd.f32 %v605_v25, %v604_v24 }
 0x482   :  { %v607_v27 = vmul.f32 0.125, %v606_v26 }
 0x484   :  { %v608_v28 = vadd.f32 1e-05, %v607_v27 }
 0x486   :  { %802 = vrsqrt.f32 %v608_v28 }
 0x487   :  { %804 = vrsqrt.f32 %v633_v57 }
 0x490   :  { %v803_v29 = vpop.eup %802 }
 0x491   :  { %v610_v31 = vmul.f32 %v803_v29, %v598_v18  ;;  %v805_v58 = vpop.eup %804 }
 0x492   :  { %v635_v61 = vmul.f32 %v805_v58, %v623_v47 }
 0x493   :  { %v611_v33 = vmul.f32 %v610_v31, %v33_v30 }
 0x494   :  { %v640_v1 = vmul.f32 %v638_v62, %v635_v61 }
 0x495   :  { %v612_v34 = vadd.f32 %v611_v33, %v34_v32 }
 0x497   :  { %v613_v36 = vmax.f32 %v612_v34, 0.0 }
 0x499   :  { %v653_v37 = vmul.f32 %v651_v35, %v613_v36 }
 0x49b   :  { %v654_v38 = vsel %vm516_vm9, %v653_v37, 0.0 }
 0x49c   :  { %655 = vadd.xlane.f32.xlu1 %v654_v38 }
 0x4ad   :  { %641 = vrot.lane.b32.xlu1 %v1085_v60, %s815_s2 }
 0x529   :  { %v656_v63 = vpop.xlane.xlu1 %655 }
 0x52a   :  { %v657_v4 = vadd.f32 %v656_v63, %v648_v59 }
 0x52d   :  { %v642_v2 = vpop.permute.xlu1 %641 }
 0x52e   :  { %v644_v0 = vadd.f32 %v642_v2, %v640_v1 }
 0x530   :  { %v661_v5 = vmul.f32 %v659_v3, %v644_v0 }
 0x532   :  { %v662_v6 = vadd.f32 %v661_v5, %v657_v4 }
 0x534   :  { %v663_v7 = vadd.f32 %v662_v6, %v1085_v60 }
 0x536   :  { %665 = vrot.lane.b32.xlu1 %v663_v7, %s816_s6 }
 0x5a8   :  { %v666_v8 = vpop.permute.xlu1 %665 }
 0x5a9   :  { %669 = vst.msk [vmem:[%s1111_s7] sm:$0xff] %vm668_vm11, %v666_v8 }

</bundles_post_ra>
